<compile_context>
chip_gen: v7x
topology: tpu7x:2x2x1
jax: 0.10.0
libtpu: 0.0.40
codegen_flags: <defaults>
</compile_context>

<pallas_src>
import functools

import jax
import jax.numpy as jnp
from jax.experimental import pallas as pl
from jax.experimental.pallas import tpu as pltpu

# --- logical (PyTorch) dims --------------------------------------------------
STATE_DIM = 4                    # ContinuousCartPole observation dim
ACTION_DIM = 1                   # ContinuousCartPole action dim
IN_DIM = STATE_DIM + ACTION_DIM  # = 5 (cat([x, u], 1))
H1, H2 = 400, 300
OUT_DIM = 1

# --- padded (TPU-friendly) dims ----------------------------------------------
IN_PAD = 8       # sublane-aligned rows of w1 / feature cols of xu
H1_PAD = 512     # 400 -> 512 (lane multiple)
H2_PAD = 384     # 300 -> 384 (lane multiple)

MAX_TILE = 512   # largest batch tile (VMEM use is tiny; amortizes per-step cost)


def _round_up(n, m):
    return ((n + m - 1) // m) * m


def _pad2(a, rows, cols, dtype=None):
    """Zero-pad a 2-D array up to (rows, cols), optionally casting dtype."""
    dt = a.dtype if dtype is None else dtype
    out = jnp.zeros((rows, cols), dt)
    return out.at[: a.shape[0], : a.shape[1]].set(a.astype(dt))


def _critic_kernel(x_ref, w1_ref, b1_ref, w2_ref, b2_ref, w3_ref, b3_ref, o_ref,
                   *, mxu_l1):
    # x_ref:  (m_tile, IN_PAD)   f32   (concat([state, action]) zero-padded)
    # w1_ref: (IN_PAD, H1_PAD)   f32
    # b1_ref: (1, H1_PAD)        f32
    # w2_ref: (H1_PAD, H2_PAD)   bf16
    # b2_ref: (1, H2_PAD)        f32
    # w3_ref: (1, H2_PAD)        f32   (the single real output column, as a row)
    # b3_ref: (1, 1)             f32
    # o_ref:  (m_tile, 1)        f32
    x = x_ref[...]
    m = x.shape[0]

    # ---- layer 1 -------------------------------------------------------------
    if mxu_l1:
        # Large tiles: a single K=8 pass on the MXU; keeps the VALU slot free.
        h1 = jnp.dot(x, w1_ref[...],
                     preferred_element_type=jnp.float32) + b1_ref[...]
    else:
        # Tiny tiles: 5 unrolled column FMAs on the VPU (avoids MXU fill/drain).
        w1 = w1_ref[...]
        h1 = jnp.broadcast_to(b1_ref[...], (m, H1_PAD))
        for k in range(IN_DIM):
            h1 = h1 + x[:, k:k + 1] * w1[k:k + 1, :]
    h1 = jnp.maximum(h1, 0.0)                     # ReLU (VPU)

    # ---- layer 2 on the MXU: bf16 operands, f32 accumulation ------------------
    h2 = jnp.dot(h1.astype(jnp.bfloat16), w2_ref[...],
                 preferred_element_type=jnp.float32) + b2_ref[...]
    h2 = jnp.maximum(h2, 0.0)                     # ReLU (VPU)

    # ---- layer 3: single output column -> VPU multiply + XLU lane-reduce ------
    # f32 throughout; produces a narrow (m, 1) result (no 128-wide padded store).
    q = jnp.sum(h2 * w3_ref[...], axis=-1, keepdims=True) + b3_ref[...]
    o_ref[...] = q.astype(o_ref.dtype)


def _pick_tile(batch):
    """Batch-tile size: single 8-aligned tile for small batches, big tiles for
    large batches but always >= 2 grid steps (so both v7x TensorCores work)."""
    if batch <= 128:
        return _round_up(batch, 8)
    half = _round_up((batch + 1) // 2, 8)
    return min(MAX_TILE, half)


def critic_forward(x, u, params):
    """Q(x, u) for a batch of states/actions. Returns (batch, 1) float32."""
    w1, b1, w2, b2, w3, b3 = params
    batch = x.shape[0]

    m_tile = _pick_tile(batch)
    b_pad = _round_up(batch, m_tile)
    use_mxu_l1 = m_tile >= 128        # compile-time path selection

    # TODO(synk): eliminate this concat+pad dispatch (separate x/u inputs with a
    # ragged last block, or CompilerParams(allow_input_fusion)) for per-step RL
    # inference where launch overhead is comparable to the kernel itself.
    xu = jnp.concatenate([x.astype(jnp.float32), u.astype(jnp.float32)], axis=1)
    xu_pad = jnp.zeros((b_pad, IN_PAD), jnp.float32).at[:batch, :IN_DIM].set(xu)

    grid = (b_pad // m_tile,)
    out = pl.pallas_call(
        functools.partial(_critic_kernel, mxu_l1=use_mxu_l1),
        out_shape=jax.ShapeDtypeStruct((b_pad, 1), jnp.float32),
        grid_spec=pltpu.PrefetchScalarGridSpec(
            num_scalar_prefetch=0,
            grid=grid,
            in_specs=[
                pl.BlockSpec((m_tile, IN_PAD), lambda i: (i, 0)),   # xu tile
                pl.BlockSpec((IN_PAD, H1_PAD), lambda i: (0, 0)),   # w1 (resident)
                pl.BlockSpec((1, H1_PAD), lambda i: (0, 0)),        # b1
                pl.BlockSpec((H1_PAD, H2_PAD), lambda i: (0, 0)),   # w2 (resident)
                pl.BlockSpec((1, H2_PAD), lambda i: (0, 0)),        # b2
                pl.BlockSpec((1, H2_PAD), lambda i: (0, 0)),        # w3 row
                pl.BlockSpec((1, 1), lambda i: (0, 0)),             # b3
            ],
            out_specs=pl.BlockSpec((m_tile, 1), lambda i: (i, 0)),  # narrow Q col
        ),
        compiler_params=pltpu.CompilerParams(
            dimension_semantics=("parallel",),   # batch tiles shard across TCs (v7x)
        ),
    )(xu_pad, w1, b1, w2, b2, w3, b3)

    return out[:batch, :OUT_DIM]


def init_params(key):
    """PyTorch-Linear-style init (U[-1/sqrt(fan_in), +1/sqrt(fan_in)]), stored
    transposed (in, out) and zero-padded to TPU-aligned shapes. Only w2 (the
    HBM-dominant weight) is stored in bf16; layers 1 and 3 stay f32."""
    ks = jax.random.split(key, 6)

    def uniform(k, shape, fan_in):
        bound = 1.0 / (fan_in ** 0.5)
        return jax.random.uniform(k, shape, jnp.float32, -bound, bound)

    w1 = uniform(ks[0], (IN_DIM, H1), IN_DIM)
    b1 = uniform(ks[1], (1, H1), IN_DIM)
    w2 = uniform(ks[2], (H1, H2), H1)
    b2 = uniform(ks[3], (1, H2), H1)
    w3 = uniform(ks[4], (OUT_DIM, H2), H2)   # kept as a row vector (1, H2)
    b3 = uniform(ks[5], (1, OUT_DIM), H2)

    return (
        _pad2(w1, IN_PAD, H1_PAD),                  # f32
        _pad2(b1, 1, H1_PAD),                       # f32
        _pad2(w2, H1_PAD, H2_PAD, jnp.bfloat16),    # bf16 (dominant weight)
        _pad2(b2, 1, H2_PAD),                       # f32
        _pad2(w3, 1, H2_PAD),                       # f32 row (layer 3 stays f32)
        _pad2(b3, 1, 1),                            # f32 scalar
    )


def critic_ref(x, u, params):
    """Pure-JAX reference (f32 math on the same stored weights)."""
    w1, b1, w2, b2, w3, b3 = params
    xu = jnp.concatenate([x, u], axis=1).astype(jnp.float32)
    xu = jnp.pad(xu, ((0, 0), (0, IN_PAD - IN_DIM)))
    h1 = jnp.maximum(xu @ w1 + b1, 0.0)
    h2 = jnp.maximum(h1 @ w2.astype(jnp.float32) + b2, 0.0)
    q = h2 @ w3.astype(jnp.float32).T + b3
    return q[:, :OUT_DIM]


if __name__ == "__main__":
    key = jax.random.PRNGKey(0)
    k_params, k_x, k_u = jax.random.split(key, 3)
    params = init_params(k_params)

    # --- small-batch latency path (VPU layer 1, grid = 1) ---------------------
    x = jax.random.normal(k_x, (2, STATE_DIM), jnp.float32)
    u = jax.random.normal(k_u, (2, ACTION_DIM), jnp.float32)
    out = critic_forward(x, u, params)
    jax.block_until_ready(out)
    expected = critic_ref(x, u, params)
    assert out.shape == (2, OUT_DIM)
    # bf16 MXU operands (layer 2 only) vs f32 reference -> loosened tolerance
    assert jnp.allclose(out, expected, atol=1e-2, rtol=1e-2), (out, expected)

    # --- throughput path (MXU layer 1, grid = 2 -> both v7x TCs active) -------
    xb = jax.random.normal(k_x, (256, STATE_DIM), jnp.float32)
    ub = jax.random.normal(k_u, (256, ACTION_DIM), jnp.float32)
    outb = critic_forward(xb, ub, params)
    jax.block_until_ready(outb)
    expectedb = critic_ref(xb, ub, params)
    assert outb.shape == (256, OUT_DIM)
    assert jnp.allclose(outb, expectedb, atol=1e-2, rtol=1e-2), (outb, expectedb)

    print("KERNEL_OK")
</pallas_src>

<mosaic_0001>
module attributes {stable_mosaic.version = 11 : i64} {
  func.func @_critic_kernel(%arg0: i32, %arg1: memref<8x8xf32, #tpu.memory_space<vmem>>, %arg2: memref<8x512xf32, #tpu.memory_space<vmem>>, %arg3: memref<1x512xf32, #tpu.memory_space<vmem>>, %arg4: memref<512x384xbf16, #tpu.memory_space<vmem>>, %arg5: memref<1x384xf32, #tpu.memory_space<vmem>>, %arg6: memref<1x384xf32, #tpu.memory_space<vmem>>, %arg7: memref<1x1xf32, #tpu.memory_space<vmem>>, %arg8: memref<8x1xf32, #tpu.memory_space<vmem>>) attributes {dimension_semantics = [#tpu.dimension_semantics<parallel>], iteration_bounds = array<i64: 1>, scalar_prefetch = 0 : i64, scratch_operands = 0 : i64, tpu.core_type = #tpu.core_type<tc>, window_params = [{transform_indices = @transform_0, window_bounds = array<i64: 8, 8>}, {pipeline_mode = #tpu.pipeline_mode<synchronous>, transform_indices = @transform_1, window_bounds = array<i64: 8, 512>}, {pipeline_mode = #tpu.pipeline_mode<synchronous>, transform_indices = @transform_2, window_bounds = array<i64: 1, 512>}, {pipeline_mode = #tpu.pipeline_mode<synchronous>, transform_indices = @transform_3, window_bounds = array<i64: 512, 384>}, {pipeline_mode = #tpu.pipeline_mode<synchronous>, transform_indices = @transform_4, window_bounds = array<i64: 1, 384>}, {pipeline_mode = #tpu.pipeline_mode<synchronous>, transform_indices = @transform_5, window_bounds = array<i64: 1, 384>}, {pipeline_mode = #tpu.pipeline_mode<synchronous>, transform_indices = @transform_6, window_bounds = array<i64: 1, 1>}, {transform_indices = @transform_7, window_bounds = array<i64: 8, 1>}]} {
    %c0 = arith.constant 0 : index
    %c0_0 = arith.constant 0 : index
    %0 = vector.load %arg1[%c0, %c0_0] : memref<8x8xf32, #tpu.memory_space<vmem>>, vector<8x8xf32>
    %c0_1 = arith.constant 0 : index
    %c0_2 = arith.constant 0 : index
    %1 = vector.load %arg2[%c0_1, %c0_2] : memref<8x512xf32, #tpu.memory_space<vmem>>, vector<8x512xf32>
    %c0_3 = arith.constant 0 : index
    %c0_4 = arith.constant 0 : index
    %2 = vector.load %arg3[%c0_3, %c0_4] : memref<1x512xf32, #tpu.memory_space<vmem>>, vector<1x512xf32>
    %3 = vector.shape_cast %2 : vector<1x512xf32> to vector<1x512xf32>
    %4 = vector.broadcast %3 : vector<1x512xf32> to vector<8x512xf32>
    %5 = vector.extract_strided_slice %0 {offsets = [0, 0], sizes = [8, 1], strides = [1, 1]} : vector<8x8xf32> to vector<8x1xf32>
    %6 = vector.extract_strided_slice %1 {offsets = [0, 0], sizes = [1, 512], strides = [1, 1]} : vector<8x512xf32> to vector<1x512xf32>
    %7 = vector.broadcast %5 : vector<8x1xf32> to vector<8x512xf32>
    %8 = vector.broadcast %6 : vector<1x512xf32> to vector<8x512xf32>
    %9 = arith.mulf %7, %8 : vector<8x512xf32>
    %10 = arith.addf %4, %9 : vector<8x512xf32>
    %11 = vector.extract_strided_slice %0 {offsets = [0, 1], sizes = [8, 1], strides = [1, 1]} : vector<8x8xf32> to vector<8x1xf32>
    %12 = vector.extract_strided_slice %1 {offsets = [1, 0], sizes = [1, 512], strides = [1, 1]} : vector<8x512xf32> to vector<1x512xf32>
    %13 = vector.broadcast %11 : vector<8x1xf32> to vector<8x512xf32>
    %14 = vector.broadcast %12 : vector<1x512xf32> to vector<8x512xf32>
    %15 = arith.mulf %13, %14 : vector<8x512xf32>
    %16 = arith.addf %10, %15 : vector<8x512xf32>
    %17 = vector.extract_strided_slice %0 {offsets = [0, 2], sizes = [8, 1], strides = [1, 1]} : vector<8x8xf32> to vector<8x1xf32>
    %18 = vector.extract_strided_slice %1 {offsets = [2, 0], sizes = [1, 512], strides = [1, 1]} : vector<8x512xf32> to vector<1x512xf32>
    %19 = vector.broadcast %17 : vector<8x1xf32> to vector<8x512xf32>
    %20 = vector.broadcast %18 : vector<1x512xf32> to vector<8x512xf32>
    %21 = arith.mulf %19, %20 : vector<8x512xf32>
    %22 = arith.addf %16, %21 : vector<8x512xf32>
    %23 = vector.extract_strided_slice %0 {offsets = [0, 3], sizes = [8, 1], strides = [1, 1]} : vector<8x8xf32> to vector<8x1xf32>
    %24 = vector.extract_strided_slice %1 {offsets = [3, 0], sizes = [1, 512], strides = [1, 1]} : vector<8x512xf32> to vector<1x512xf32>
    %25 = vector.broadcast %23 : vector<8x1xf32> to vector<8x512xf32>
    %26 = vector.broadcast %24 : vector<1x512xf32> to vector<8x512xf32>
    %27 = arith.mulf %25, %26 : vector<8x512xf32>
    %28 = arith.addf %22, %27 : vector<8x512xf32>
    %29 = vector.extract_strided_slice %0 {offsets = [0, 4], sizes = [8, 1], strides = [1, 1]} : vector<8x8xf32> to vector<8x1xf32>
    %30 = vector.extract_strided_slice %1 {offsets = [4, 0], sizes = [1, 512], strides = [1, 1]} : vector<8x512xf32> to vector<1x512xf32>
    %31 = vector.broadcast %29 : vector<8x1xf32> to vector<8x512xf32>
    %32 = vector.broadcast %30 : vector<1x512xf32> to vector<8x512xf32>
    %33 = arith.mulf %31, %32 : vector<8x512xf32>
    %34 = arith.addf %28, %33 : vector<8x512xf32>
    %cst = arith.constant 0.000000e+00 : f32
    %35 = vector.broadcast %cst : f32 to vector<8x512xf32>
    %36 = arith.maximumf %34, %35 : vector<8x512xf32>
    %37 = arith.truncf %36 : vector<8x512xf32> to vector<8x512xbf16>
    %c0_5 = arith.constant 0 : index
    %c0_6 = arith.constant 0 : index
    %38 = vector.load %arg4[%c0_5, %c0_6] : memref<512x384xbf16, #tpu.memory_space<vmem>>, vector<512x384xbf16>
    %cst_7 = arith.constant dense<0.000000e+00> : vector<8x384xf32>
    %39 = tpu.matmul %37, %38, %cst_7 {dimension_numbers = #tpu.dot_dimension_numbers<[1], [0], [0], [1], [0, 0, 1, 1], [], []>} : vector<8x512xbf16>, vector<512x384xbf16>, vector<8x384xf32> -> vector<8x384xf32>
    %c0_8 = arith.constant 0 : index
    %c0_9 = arith.constant 0 : index
    %40 = vector.load %arg5[%c0_8, %c0_9] : memref<1x384xf32, #tpu.memory_space<vmem>>, vector<1x384xf32>
    %41 = vector.broadcast %40 : vector<1x384xf32> to vector<8x384xf32>
    %42 = arith.addf %39, %41 : vector<8x384xf32>
    %cst_10 = arith.constant 0.000000e+00 : f32
    %43 = vector.broadcast %cst_10 : f32 to vector<8x384xf32>
    %44 = arith.maximumf %42, %43 : vector<8x384xf32>
    %c0_11 = arith.constant 0 : index
    %c0_12 = arith.constant 0 : index
    %45 = vector.load %arg6[%c0_11, %c0_12] : memref<1x384xf32, #tpu.memory_space<vmem>>, vector<1x384xf32>
    %46 = vector.broadcast %45 : vector<1x384xf32> to vector<8x384xf32>
    %47 = arith.mulf %44, %46 : vector<8x384xf32>
    %cst_13 = arith.constant dense<0.000000e+00> : vector<8xf32>
    %48 = vector.multi_reduction <add>, %47, %cst_13 [1] : vector<8x384xf32> to vector<8xf32>
    %49 = vector.shape_cast %48 : vector<8xf32> to vector<8x1xf32>
    %c0_14 = arith.constant 0 : index
    %c0_15 = arith.constant 0 : index
    %50 = vector.load %arg7[%c0_14, %c0_15] : memref<1x1xf32, #tpu.memory_space<vmem>>, vector<1x1xf32>
    %51 = vector.broadcast %50 : vector<1x1xf32> to vector<8x1xf32>
    %52 = arith.addf %49, %51 : vector<8x1xf32>
    %c0_16 = arith.constant 0 : index
    %c0_17 = arith.constant 0 : index
    %53 = vector.load %arg8[%c0_16, %c0_17] : memref<8x1xf32, #tpu.memory_space<vmem>>, vector<8x1xf32>
    tpu.vector_store %arg8[%c0_16, %c0_17], %52 {strides = array<i32>} : memref<8x1xf32, #tpu.memory_space<vmem>>, vector<8x1xf32>,
    return
  }
  func.func @transform_0(%arg0: i32) -> (i32, i32) {
    %c0_i32 = arith.constant 0 : i32
    %c0_i32_0 = arith.constant 0 : i32
    return %arg0, %c0_i32 : i32, i32
  }
  func.func @transform_1(%arg0: i32) -> (i32, i32) {
    %c0_i32 = arith.constant 0 : i32
    %c0_i32_0 = arith.constant 0 : i32
    %c0_i32_1 = arith.constant 0 : i32
    return %c0_i32, %c0_i32_0 : i32, i32
  }
  func.func @transform_2(%arg0: i32) -> (i32, i32) {
    %c0_i32 = arith.constant 0 : i32
    %c0_i32_0 = arith.constant 0 : i32
    %c0_i32_1 = arith.constant 0 : i32
    return %c0_i32, %c0_i32_0 : i32, i32
  }
  func.func @transform_3(%arg0: i32) -> (i32, i32) {
    %c0_i32 = arith.constant 0 : i32
    %c0_i32_0 = arith.constant 0 : i32
    %c0_i32_1 = arith.constant 0 : i32
    return %c0_i32, %c0_i32_0 : i32, i32
  }
  func.func @transform_4(%arg0: i32) -> (i32, i32) {
    %c0_i32 = arith.constant 0 : i32
    %c0_i32_0 = arith.constant 0 : i32
    %c0_i32_1 = arith.constant 0 : i32
    return %c0_i32, %c0_i32_0 : i32, i32
  }
  func.func @transform_5(%arg0: i32) -> (i32, i32) {
    %c0_i32 = arith.constant 0 : i32
    %c0_i32_0 = arith.constant 0 : i32
    %c0_i32_1 = arith.constant 0 : i32
    return %c0_i32, %c0_i32_0 : i32, i32
  }
  func.func @transform_6(%arg0: i32) -> (i32, i32) {
    %c0_i32 = arith.constant 0 : i32
    %c0_i32_0 = arith.constant 0 : i32
    %c0_i32_1 = arith.constant 0 : i32
    return %c0_i32, %c0_i32_0 : i32, i32
  }
  func.func @transform_7(%arg0: i32) -> (i32, i32) {
    %c0_i32 = arith.constant 0 : i32
    %c0_i32_0 = arith.constant 0 : i32
    return %arg0, %c0_i32 : i32, i32
  }
}

</mosaic_0001>

<bundles_post_ra>
// kernel: tpu_custom_call.1
= control target key start
LH: loop header
LB: loop body
LE: loop exit
PB: predicated region body
PF: predicated region fallthrough
CT: control target
= control target key end

     0   :  { %s1649_s0 = inlined_call_operand.hbm [shape: f32[8,8], index: 0, kind: input, shape index: {}]   ;;  %s1650_s1 = inlined_call_operand.hbm [shape: f32[8,512], index: 1, kind: input, shape index: {}]   ;;  %s1651_s2 = inlined_call_operand.vmem [shape: f32[1,512], index: 2, kind: input, shape index: {}]   ;;  %s1652_s3 = inlined_call_operand.hbm [shape: bf16[512,384], index: 3, kind: input, shape index: {}]   ;;  %s1653_s4 = inlined_call_operand.vmem [shape: f32[1,384], index: 4, kind: input, shape index: {}]   ;;  %s1654_s5 = inlined_call_operand.vmem [shape: f32[1,384], index: 5, kind: input, shape index: {}]   ;;  %s1655_s6 = inlined_call_operand.<no memory space> [shape: f32[1,1], index: 6, kind: input, shape index: {}]   ;;  %s1656_s7 = inlined_call_operand.vmem [shape: f32[8,1], index: 7, kind: output, shape index: {}]  }
   0x1   :  { %v12_v0 = vstv %s1655_s6 }
   0x2   :  { %13 = vst [vmem:[#allocation2] sm:$0x1] %v12_v0 }
   0x3   :  { %14 = vsyncpa [#allocation4], 0 }
   0x4   :  { %15 = vsyncpa [#allocation6], 0  ;;  %s1465_s26 = smov [#allocation5]   ;;  %s1466_s28 = smov [#allocation3]  }
   0x5   :  { %s32_s27 = sshll.u32 %s1465_s26, 4  ;;  %s22_s29 = sshll.u32 %s1466_s28, 4  ;;  %s33_s27 = int_to_ptr.vmem [resolvable:$true] %s32_s27  ;;  %s23_s29 = int_to_ptr.vmem [resolvable:$true] %s22_s29 }
   0x6   :  { %s1395_s9 = scalar_lea.hbm %s1650_s1, 512 }
   0x7   :  { %p1396_p0 = scmp.ne.s32.totalorder %s1650_s1, %s1395_s9  ;;  %p1399_p1 = scmp.lt.u32.totalorder %s1395_s9, %s1650_s1 }
   0x9   :  { %p1401_p2 = pnand %p1399_p1, %p1396_p0 }
   0xb   :  { %1404 = shalt.err (!%p1401_p2)
}
   0xc   :  { %s1405_s6 = scalar_lea.vmem %s33_s27, 512  ;;  %p1410_p4 = scmp.lt.s32.totalorder %s33_s27, %s33_s27 }
   0xd   :  { %p1406_p3 = scmp.ne.s32.totalorder %s33_s27, %s1405_s6  ;;  %p1411_p5 = scmp.lt.s32.totalorder %s1405_s6, %s1405_s6 }
   0xf   :  { %p1412_p6 = por %p1411_p5, %p1410_p4 }
  0x11   :  { %p1413_p7 = pnand %p1412_p6, %p1406_p3 }
  0x13   :  { %1416 = shalt.err (!%p1413_p7)
}
  0x14   :  { %35 = dma.hbm_to_vmem [thread:$0]  %s1650_s1, 512, %s33_s27, [#allocation6]  }
  0x15   :  { %s1417_s18 = scalar_lea.hbm %s1649_s0, 128 }
  0x16   :  { %p1418_p8 = scmp.ne.s32.totalorder %s1649_s0, %s1417_s18  ;;  %p1421_p9 = scmp.lt.u32.totalorder %s1417_s18, %s1649_s0 }
  0x18   :  { %p1423_p10 = pnand %p1421_p9, %p1418_p8 }
  0x1a   :  { %1426 = shalt.err (!%p1423_p10)
}
  0x1b   :  { %s1427_s23 = scalar_lea.vmem %s23_s29, 128  ;;  %p1432_p12 = scmp.lt.s32.totalorder %s23_s29, %s23_s29 }
  0x1c   :  { %p1428_p11 = scmp.ne.s32.totalorder %s23_s29, %s1427_s23  ;;  %p1433_p13 = scmp.lt.s32.totalorder %s1427_s23, %s1427_s23 }
  0x1e   :  { %p1434_p0 = por %p1433_p13, %p1432_p12 }
  0x20   :  { %p1435_p1 = pnand %p1434_p0, %p1428_p11 }
  0x22   :  { %1438 = shalt.err (!%p1435_p1)
}
  0x23   :  { %25 = dma.hbm_to_vmem [thread:$0]  %s1649_s0, 128, %s23_s29, [#allocation4]  }
  0x24   :  { %s1467_s25 = smov [#allocation7]   ;;  %s1439_s30 = scalar_lea.hbm %s1652_s3, 12288 }
  0x25   :  { %s43_s26 = sshll.u32 %s1467_s25, 4  ;;  %p1440_p2 = scmp.ne.s32.totalorder %s1652_s3, %s1439_s30  ;;  %s44_s26 = int_to_ptr.vmem [resolvable:$true] %s43_s26 }
  0x26   :  { %p1443_p3 = scmp.lt.u32.totalorder %s1439_s30, %s1652_s3 }
  0x28   :  { %p1445_p4 = pnand %p1443_p3, %p1440_p2 }
  0x2a   :  { %1448 = shalt.err (!%p1445_p4)
}
  0x2b   :  { %s1449_s12 = scalar_lea.vmem %s44_s26, 12288  ;;  %p1454_p6 = scmp.lt.s32.totalorder %s44_s26, %s44_s26 }
  0x2c   :  { %p1450_p5 = scmp.ne.s32.totalorder %s44_s26, %s1449_s12  ;;  %p1455_p7 = scmp.lt.s32.totalorder %s1449_s12, %s1449_s12 }
  0x2e   :  { %p1456_p8 = por %p1455_p7, %p1454_p6 }
  0x30   :  { %p1457_p9 = pnand %p1456_p8, %p1450_p5 }
  0x32   :  { %1460 = shalt.err (!%p1457_p9)
}
  0x33   :  { %s1468_s0 = smov 192   ;;  %s1469_s29 = smov 12  }
  0x34   :  { %49 = dma.hbm_to_vmem [thread:$0]  %s1652_s3, 12288, %s44_s26, [#allocation6], %s1468_s0, %s1468_s0, %s1469_s29  }
  0x35   :  { %1461 = dma.done.wait [#allocation4], 128  }
  0x36   :  { %1462 = vsyncadd [#allocation4], 4294967168 }
  0x37   :  { %1463 = dma.done.wait [#allocation6], 12800  }
  0x38   :  { %1464 = vsyncadd [#allocation6], 4294954496  ;;  %v1470_v1 = vmov 0   ;;  %v1471_v2 = vmov 2   ;;  %v66_v3 = vld [vmem:[#allocation3] sm:$0xff]  ;;  %v1472_v8 = vmov 1   ;;  %v73_v57 = vlaneseq }
  0x39   :  { %1261 = vset.pattern.permute.xlu0 %v1470_v1  ;;  %1263 = vset.pattern.permute.xlu1 %v1471_v2  ;;  %v1267_v4 = vld [vmem:[#allocation7 + $0x4] ss:$12 sps:$4 sm:$0xff]   ;;  %v1269_v5 = vld [vmem:[#allocation7] ss:$12 sps:$4 sm:$0xff]   ;;  %v1270_v6 = vld [vmem:[#allocation7 + $0x1c] ss:$12 sps:$4 sm:$0xff]  }
  0x3a   :  { %95 = vperm.xlu0 %1261, %v66_v3   ;;  %151 = vperm.xlu1 %1263, %v66_v3   ;;  %v1272_v7 = vld [vmem:[#allocation7 + $0x18] ss:$12 sps:$4 sm:$0xff]   ;;  %v1473_v9 = vmov 3   ;;  %v1273_v10 = vld [vmem:[#allocation7 + $0x34] ss:$12 sps:$4 sm:$0xff]   ;;  %v1474_v13 = vmov 4  }
  0x3b   :  { %899 = vmatprep.subr.bf16.mxu0 %v1267_v4  ;;  %v1275_v11 = vld [vmem:[#allocation7 + $0x30] ss:$12 sps:$4 sm:$0xff]   ;;  %v1276_v12 = vld [vmem:[#allocation7 + $0x4c] ss:$12 sps:$4 sm:$0xff]   ;;  %v1278_v14 = vld [vmem:[#allocation7 + $0x48] ss:$12 sps:$4 sm:$0xff]  }
  0x3c   :  { %900 = vmatpush1.bf16.msra.mxu0 %v1269_v5  ;;  %v1293_v15 = vld [vmem:[#allocation7 + $0xc8] ss:$12 sps:$4 sm:$0xff]   ;;  %v1279_v16 = vld [vmem:[#allocation7 + $0x64] ss:$12 sps:$4 sm:$0xff]   ;;  %v1281_v18 = vld [vmem:[#allocation7 + $0x60] ss:$12 sps:$4 sm:$0xff]  }
  0x3d   :  { %901 = vmatprep.subr.bf16.mxu0 %v1270_v6  ;;  %1201 = vmatprep.subr.bf16.mxu1 %v1293_v15  ;;  %v1295_v17 = vld [vmem:[#allocation7 + $0x8] ss:$12 sps:$4 sm:$0xff]   ;;  %v1298_v20 = vld [vmem:[#allocation7 + $0xe0] ss:$12 sps:$4 sm:$0xff]   ;;  %v1284_v22 = vld [vmem:[#allocation7 + $0x78] ss:$12 sps:$4 sm:$0xff]  }
  0x3e   :  { %1262 = vset.pattern.permute.xlu0 %v1472_v8  ;;  %1264 = vset.pattern.permute.xlu1 %v1473_v9  ;;  %v1282_v19 = vld [vmem:[#allocation7 + $0x7c] ss:$12 sps:$4 sm:$0xff]   ;;  %v1300_v21 = vld [vmem:[#allocation7 + $0x20] ss:$12 sps:$4 sm:$0xff]   ;;  %v1303_v23 = vld [vmem:[#allocation7 + $0xf8] ss:$12 sps:$4 sm:$0xff]  }
  0x3f   :  { %123 = vperm.xlu0 %1262, %v66_v3   ;;  %179 = vperm.xlu1 %1264, %v66_v3   ;;  %v1305_v24 = vld [vmem:[#allocation7 + $0x38] ss:$12 sps:$4 sm:$0xff]   ;;  %v1285_v25 = vld [vmem:[#allocation7 + $0x94] ss:$12 sps:$4 sm:$0xff]   ;;  %v1308_v26 = vld [vmem:[#allocation7 + $0x110] ss:$12 sps:$4 sm:$0xff]  }
  0x40   :  { %902 = vmatpush1.bf16.msra.mxu0 %v1272_v7  ;;  %1202 = vmatpush3.bf16.msra.mxu1 %v1295_v17  ;;  %v1287_v27 = vld [vmem:[#allocation7 + $0x90] ss:$12 sps:$4 sm:$0xff]   ;;  %v1288_v28 = vld [vmem:[#allocation7 + $0xac] ss:$12 sps:$4 sm:$0xff]   ;;  %v1290_v30 = vld [vmem:[#allocation7 + $0xa8] ss:$12 sps:$4 sm:$0xff]  }
  0x41   :  { %903 = vmatprep.subr.bf16.mxu0 %v1273_v10  ;;  %1203 = vmatprep.subr.bf16.mxu1 %v1298_v20  ;;  %v1310_v29 = vld [vmem:[#allocation7 + $0x50] ss:$12 sps:$4 sm:$0xff]   ;;  %v1313_v31 = vld [vmem:[#allocation7 + $0x128] ss:$12 sps:$4 sm:$0xff]   ;;  %v1294_v34 = vld [vmem:[#allocation7 + $0xc0] ss:$12 sps:$4 sm:$0xff]  }
  0x42   :  { %v1291_v32 = vld [vmem:[#allocation7 + $0xc4] ss:$12 sps:$4 sm:$0xff]   ;;  %v1315_v33 = vld [vmem:[#allocation7 + $0x68] ss:$12 sps:$4 sm:$0xff]   ;;  %v1318_v35 = vld [vmem:[#allocation7 + $0x140] ss:$12 sps:$4 sm:$0xff]  }
  0x43   :  { %1265 = vset.pattern.permute.xlu1 %v1474_v13  ;;  %1266 = vset.pattern.permute.xlu0 %v1474_v13  ;;  %v1320_v36 = vld [vmem:[#allocation7 + $0x80] ss:$12 sps:$4 sm:$0xff]   ;;  %v1296_v37 = vld [vmem:[#allocation7 + $0xdc] ss:$12 sps:$4 sm:$0xff]   ;;  %v1299_v38 = vld [vmem:[#allocation7 + $0xd8] ss:$12 sps:$4 sm:$0xff]  }
  0x44   :  { %207 = vperm.xlu1 %1265, %v66_v3   ;;  %904 = vmatpush1.bf16.msra.mxu0 %v1275_v11  ;;  %v1323_v39 = vld [vmem:[#allocation7 + $0x158] ss:$12 sps:$4 sm:$0xff]   ;;  %v1301_v40 = vld [vmem:[#allocation7 + $0xf4] ss:$12 sps:$4 sm:$0xff]   ;;  %v1328_v42 = vld [vmem:[#allocation7 + $0x170] ss:$12 sps:$4 sm:$0xff]  }
  0x45   :  { %905 = vmatprep.subr.bf16.mxu0 %v1276_v12  ;;  %1204 = vmatpush3.bf16.msra.mxu1 %v1300_v21  ;;  %v1325_v41 = vld [vmem:[#allocation7 + $0x98] ss:$12 sps:$4 sm:$0xff]   ;;  %v1304_v43 = vld [vmem:[#allocation7 + $0xf0] ss:$12 sps:$4 sm:$0xff]   ;;  %v1334_v46 = vld [vmem:[#allocation7 + $0x248] ss:$12 sps:$4 sm:$0xff]  }
  0x46   :  { %1205 = vmatprep.subr.bf16.mxu1 %v1303_v23  ;;  %v1306_v44 = vld [vmem:[#allocation7 + $0x10c] ss:$12 sps:$4 sm:$0xff]   ;;  %v1330_v45 = vld [vmem:[#allocation7 + $0xb0] ss:$12 sps:$4 sm:$0xff]   ;;  %v1309_v47 = vld [vmem:[#allocation7 + $0x108] ss:$12 sps:$4 sm:$0xff]  }
  0x47   :  { %v1311_v48 = vld [vmem:[#allocation7 + $0x124] ss:$12 sps:$4 sm:$0xff]   ;;  %v1314_v49 = vld [vmem:[#allocation7 + $0x120] ss:$12 sps:$4 sm:$0xff]   ;;  %v1316_v50 = vld [vmem:[#allocation7 + $0x13c] ss:$12 sps:$4 sm:$0xff]  }
  0x48   :  { %906 = vmatpush1.bf16.msra.mxu0 %v1278_v14  ;;  %v1319_v51 = vld [vmem:[#allocation7 + $0x138] ss:$12 sps:$4 sm:$0xff]   ;;  %v1321_v52 = vld [vmem:[#allocation7 + $0x154] ss:$12 sps:$4 sm:$0xff]   ;;  %v1324_v53 = vld [vmem:[#allocation7 + $0x150] ss:$12 sps:$4 sm:$0xff]  }
  0x49   :  { %907 = vmatprep.subr.bf16.mxu0 %v1279_v16  ;;  %1206 = vmatpush3.bf16.msra.mxu1 %v1305_v24  ;;  %v1326_v54 = vld [vmem:[#allocation7 + $0x16c] ss:$12 sps:$4 sm:$0xff]   ;;  %v1329_v55 = vld [vmem:[#allocation7 + $0x168] ss:$12 sps:$4 sm:$0xff]   ;;  %v1333_v56 = vld [vmem:[#allocation7 + $0x184] ss:$12 sps:$4 sm:$0xff]  }
  0x4a   :  { %1207 = vmatprep.subr.bf16.mxu1 %v1308_v26  ;;  %v74_v58 = vshrl.u32 %v73_v57, 7  ;;  %v67_v60 = vld [vmem:[#allocation5] sm:$0xff]  ;;  %v68_v61 = vld [vmem:[#allocation5 + $0x8] sm:$0xff]  ;;  %v70_v62 = vld [vmem:[#allocation5 + $0x18] sm:$0xff]  ;;  %vm1096_vm0 = vcmask 7168  }
  0x4b   :  { %v1559_v63 = vld [vmem:[%s1651_s2] sm:$0xf] }
  0x4c   :  { %908 = vmatpush1.bf16.msra.mxu0 %v1281_v18  ;;  %v1554_v59 = vsub.s32 0, %v74_v58  ;;  %v1561_v0 = vsub.s32 1, %v74_v58  ;;  %v1563_v1 = vsub.s32 3, %v74_v58  ;;  %v1568_v5 = vsub.s32 2, %v74_v58 }
  0x4d   :  { %909 = vmatprep.subr.bf16.mxu0 %v1282_v19  ;;  %1208 = vmatpush3.bf16.msra.mxu1 %v1310_v29  ;;  %v1576_v9 = vsub.s32 4, %v74_v58 }
  0x4e   :  { %1209 = vmatprep.subr.bf16.mxu1 %v1313_v31  ;;  %v101_v2 = vrot.slane %v67_v60, %v1554_v59  ;;  %v105_v3 = vrot.slane %v68_v61, %v1554_v59  ;;  %v113_v4 = vrot.slane %v70_v62, %v1554_v59  ;;  %v76_v6 = vrot.slane %v1559_v63, %v1554_v59 }
  0x4f   :  { %v80_v10 = vrot.slane %v1559_v63, %v1561_v0  ;;  %v88_v11 = vrot.slane %v1559_v63, %v1563_v1  ;;  %v129_v15 = vrot.slane %v67_v60, %v1561_v0  ;;  %v133_v16 = vrot.slane %v68_v61, %v1561_v0 }
  0x50   :  { %910 = vmatpush1.bf16.msra.mxu0 %v1284_v22  ;;  %v141_v17 = vrot.slane %v70_v62, %v1561_v0  ;;  %v157_v18 = vrot.slane %v67_v60, %v1568_v5  ;;  %v161_v19 = vrot.slane %v68_v61, %v1568_v5  ;;  %v169_v20 = vrot.slane %v70_v62, %v1568_v5 }
  0x51   :  { %911 = vmatprep.subr.bf16.mxu0 %v1285_v25  ;;  %1210 = vmatpush3.bf16.msra.mxu1 %v1315_v33  ;;  %v185_v21 = vrot.slane %v67_v60, %v1563_v1  ;;  %v189_v22 = vrot.slane %v68_v61, %v1563_v1  ;;  %v197_v26 = vrot.slane %v70_v62, %v1563_v1 }
  0x52   :  { %1211 = vmatprep.subr.bf16.mxu1 %v1318_v35  ;;  %v217_v35 = vrot.slane %v68_v61, %v1576_v9  ;;  %v1615_v61 = vld [vmem:[#allocation5 + $0x10] sm:$0xff] }
  0x54   :  { %912 = vmatpush1.bf16.msra.mxu0 %v1287_v27 }
  0x55   :  { %913 = vmatprep.subr.bf16.mxu0 %v1288_v28  ;;  %1212 = vmatpush3.bf16.msra.mxu1 %v1320_v36  ;;  %v213_v28 = vrot.slane %v67_v60, %v1576_v9  ;;  %v225_v36 = vrot.slane %v70_v62, %v1576_v9 }
  0x56   :  { %1213 = vmatprep.subr.bf16.mxu1 %v1323_v39 }
  0x58   :  { %914 = vmatpush1.bf16.msra.mxu0 %v1290_v30 }
  0x59   :  { %915 = vmatprep.subr.bf16.mxu0 %v1291_v32  ;;  %1214 = vmatpush3.bf16.msra.mxu1 %v1325_v41 }
  0x5a   :  { %1215 = vmatprep.subr.bf16.mxu1 %v1328_v42 }
  0x5c   :  { %916 = vmatpush1.bf16.msra.mxu0 %v1294_v34 }
  0x5d   :  { %917 = vmatprep.subr.bf16.mxu0 %v1296_v37  ;;  %1216 = vmatpush3.bf16.msra.mxu1 %v1330_v45 }
  0x5e   :  { %1223 = vmatprep.subr.bf16.mxu1 %v1334_v46 }
  0x60   :  { %918 = vmatpush1.bf16.msra.mxu0 %v1299_v38 }
  0x61   :  { %919 = vmatprep.subr.bf16.mxu0 %v1301_v40 }
  0x64   :  { %920 = vmatpush1.bf16.msra.mxu0 %v1304_v43 }
  0x65   :  { %921 = vmatprep.subr.bf16.mxu0 %v1306_v44 }
  0x68   :  { %922 = vmatpush1.bf16.msra.mxu0 %v1309_v47 }
  0x69   :  { %923 = vmatprep.subr.bf16.mxu0 %v1311_v48 }
  0x6c   :  { %924 = vmatpush1.bf16.msra.mxu0 %v1314_v49 }
  0x6d   :  { %925 = vmatprep.subr.bf16.mxu0 %v1316_v50 }
  0x70   :  { %926 = vmatpush1.bf16.msra.mxu0 %v1319_v51 }
  0x71   :  { %927 = vmatprep.subr.bf16.mxu0 %v1321_v52 }
  0x74   :  { %928 = vmatpush1.bf16.msra.mxu0 %v1324_v53 }
  0x75   :  { %929 = vmatprep.subr.bf16.mxu0 %v1326_v54 }
  0x78   :  { %930 = vmatpush1.bf16.msra.mxu0 %v1329_v55 }
  0x79   :  { %940 = vmatprep.subr.bf16.mxu0 %v1333_v56 }
  0xb9   :  { %v1572_v7 = vpop.permute.xlu0 %95  ;;  %v1574_v8 = vpop.permute.xlu1 %151 }
  0xba   :  { %v114_v12 = vmul.f32 %v101_v2, %v1572_v7  ;;  %v115_v13 = vmul.f32 %v105_v3, %v1572_v7  ;;  %v117_v14 = vmul.f32 %v113_v4, %v1572_v7  ;;  %v170_v33 = vmul.f32 %v157_v18, %v1574_v8  ;;  %v1331_v2 = vld [vmem:[#allocation7 + $0x180] ss:$12 sps:$4 sm:$0xff]   ;;  %v1335_v4 = vld [vmem:[#allocation7 + $0x188] ss:$12 sps:$4 sm:$0xff]  }
  0xbb   :  { %v171_v34 = vmul.f32 %v161_v19, %v1574_v8  ;;  %v173_v37 = vmul.f32 %v169_v20, %v1574_v8  ;;  %v84_v18 = vrot.slane %v1559_v63, %v1568_v5  ;;  %v1341_v20 = vld [vmem:[#allocation7 + $0x1b0] ss:$12 sps:$4 sm:$0xff]  }
  0xbc   :  { %v118_v23 = vadd.f32 %v114_v12, %v76_v6  ;;  %v119_v24 = vadd.f32 %v115_v13, %v80_v10  ;;  %v121_v29 = vadd.f32 %v117_v14, %v88_v11  ;;  %v1338_v6 = vld [vmem:[#allocation7 + $0x19c] ss:$12 sps:$4 sm:$0xff]   ;;  %v1339_v10 = vld [vmem:[#allocation7 + $0x260] ss:$12 sps:$4 sm:$0xff]   ;;  %v109_v11 = vrot.slane %v1615_v61, %v1554_v59  ;;  %v1336_v13 = vld [vmem:[#allocation7 + $0x198] ss:$12 sps:$4 sm:$0xff]  }
  0xbd   :  { %v1340_v14 = vld [vmem:[#allocation7 + $0x1a0] ss:$12 sps:$4 sm:$0xff]   ;;  %v1350_v63 = vld [vmem:[#allocation7 + $0x1d0] ss:$12 sps:$4 sm:$0xff]  }
  0xbe   :  { %v1593_v25 = vpop.permute.xlu0 %123  ;;  %v1596_v27 = vpop.permute.xlu1 %179  ;;  %v116_v19 = vmul.f32 %v109_v11, %v1572_v7  ;;  %v1353_v7 = vld [vmem:[#allocation7 + $0x1e4] ss:$12 sps:$4 sm:$0xff]  }
  0xbf   :  { %v142_v30 = vmul.f32 %v129_v15, %v1593_v25  ;;  %v143_v31 = vmul.f32 %v133_v16, %v1593_v25  ;;  %v145_v32 = vmul.f32 %v141_v17, %v1593_v25  ;;  %v198_v41 = vmul.f32 %v185_v21, %v1596_v27  ;;  %v1343_v16 = vld [vmem:[#allocation7 + $0x1b4] ss:$12 sps:$4 sm:$0xff]   ;;  %v1344_v17 = vld [vmem:[#allocation7 + $0x278] ss:$12 sps:$4 sm:$0xff]  }
  0xc0   :  { %v199_v42 = vmul.f32 %v189_v22, %v1596_v27  ;;  %v201_v43 = vmul.f32 %v197_v26, %v1596_v27  ;;  %v137_v15 = vrot.slane %v1615_v61, %v1561_v0  ;;  %v1345_v21 = vld [vmem:[#allocation7 + $0x1b8] ss:$12 sps:$4 sm:$0xff]   ;;  %v120_v26 = vadd.f32 %v116_v19, %v84_v18 }
  0xc1   :  { %v146_v38 = vadd.f32 %v142_v30, %v118_v23  ;;  %v147_v39 = vadd.f32 %v143_v31, %v119_v24  ;;  %v149_v40 = vadd.f32 %v145_v32, %v121_v29  ;;  %v1348_v23 = vld [vmem:[#allocation7 + $0x1cc] ss:$12 sps:$4 sm:$0xff]   ;;  %v1349_v24 = vld [vmem:[#allocation7 + $0x290] ss:$12 sps:$4 sm:$0xff]   ;;  %v1346_v29 = vld [vmem:[#allocation7 + $0x1c8] ss:$12 sps:$4 sm:$0xff]  }
  0xc2   :  { %v144_v22 = vmul.f32 %v137_v15, %v1593_v25  ;;  %v1354_v31 = vld [vmem:[#allocation7 + $0x2a8] ss:$12 sps:$4 sm:$0xff]   ;;  %v193_v25 = vrot.slane %v1615_v61, %v1563_v1 }
  0xc3   :  { %v1610_v44 = vpop.permute.xlu1 %207  ;;  %v175_v45 = vadd.f32 %v171_v34, %v147_v39  ;;  %v174_v46 = vadd.f32 %v170_v33, %v146_v38  ;;  %v177_v47 = vadd.f32 %v173_v37, %v149_v40  ;;  %v1351_v33 = vld [vmem:[#allocation7 + $0x1e0] ss:$12 sps:$4 sm:$0xff]   ;;  %v1355_v34 = vld [vmem:[#allocation7 + $0x1e8] ss:$12 sps:$4 sm:$0xff]  }
  0xc4   :  { %v226_v48 = vmul.f32 %v213_v28, %v1610_v44  ;;  %v227_v49 = vmul.f32 %v217_v35, %v1610_v44  ;;  %v229_v50 = vmul.f32 %v225_v36, %v1610_v44  ;;  %v165_v28 = vrot.slane %v1615_v61, %v1568_v5  ;;  %v1358_v37 = vld [vmem:[#allocation7 + $0x1fc] ss:$12 sps:$4 sm:$0xff]   ;;  %v1359_v38 = vld [vmem:[#allocation7 + $0x2c0] ss:$12 sps:$4 sm:$0xff]  }
  0xc5   :  { %v203_v51 = vadd.f32 %v199_v42, %v175_v45  ;;  %v202_v52 = vadd.f32 %v198_v41, %v174_v46  ;;  %v205_v53 = vadd.f32 %v201_v43, %v177_v47  ;;  %v148_v30 = vadd.f32 %v144_v22, %v120_v26  ;;  %v1360_v40 = vld [vmem:[#allocation7 + $0x200] ss:$12 sps:$4 sm:$0xff]   ;;  %v1364_v43 = vld [vmem:[#allocation7 + $0x2d8] ss:$12 sps:$4 sm:$0xff]  }
  0xc6   :  { %v172_v32 = vmul.f32 %v165_v28, %v1574_v8  ;;  %v221_v35 = vrot.slane %v1615_v61, %v1576_v9  ;;  %v200_v39 = vmul.f32 %v193_v25, %v1596_v27  ;;  %v1356_v8 = vld [vmem:[#allocation7 + $0x1f8] ss:$12 sps:$4 sm:$0xff]   ;;  %v1363_v42 = vld [vmem:[#allocation7 + $0x214] ss:$12 sps:$4 sm:$0xff]   ;;  %v1361_v9 = vld [vmem:[#allocation7 + $0x210] ss:$12 sps:$4 sm:$0xff]  }
  0xc7   :  { %v231_v54 = vadd.f32 %v227_v49, %v203_v51  ;;  %v230_v55 = vadd.f32 %v226_v48, %v202_v52  ;;  %v233_v56 = vadd.f32 %v229_v50, %v205_v53  ;;  %v1365_v45 = vld [vmem:[#allocation7 + $0x218] ss:$12 sps:$4 sm:$0xff]   ;;  %v1369_v27 = vld [vmem:[#allocation7 + $0x2f0] ss:$12 sps:$4 sm:$0xff]   ;;  %v1366_v48 = vld [vmem:[#allocation7 + $0x228] ss:$12 sps:$4 sm:$0xff]  }
  0xc8   :  { %v176_v36 = vadd.f32 %v172_v32, %v148_v30  ;;  %v228_v1 = vmul.f32 %v221_v35, %v1610_v44  ;;  %v1368_v47 = vld [vmem:[#allocation7 + $0x22c] ss:$12 sps:$4 sm:$0xff]   ;;  %v1370_v49 = vld [vmem:[#allocation7 + $0x230] ss:$12 sps:$4 sm:$0xff]  }
  0xc9   :  { %v235_v57 = vmax.f32 %v231_v54, 0.0  ;;  %v234_v58 = vmax.f32 %v230_v55, 0.0  ;;  %v237_v60 = vmax.f32 %v233_v56, 0.0  ;;  %v1373_v44 = vld [vmem:[#allocation7 + $0x244] ss:$12 sps:$4 sm:$0xff]  }
  0xca   :  { %v204_v41 = vadd.f32 %v200_v39, %v176_v36  ;;  %v1371_v51 = vld [vmem:[#allocation7 + $0x240] ss:$12 sps:$4 sm:$0xff]   ;;  %v1376_v53 = vld [vmem:[#allocation7 + $0x25c] ss:$12 sps:$4 sm:$0xff]   ;;  %v1374_v54 = vld [vmem:[#allocation7 + $0x258] ss:$12 sps:$4 sm:$0xff]  }
  0xcb   :  { %v239_v62 = vpack.c.bf16 %v235_v57, %v235_v57  ;;  %v238_v3 = vpack.c.bf16 %v234_v58, %v234_v58  ;;  %v241_v12 = vpack.c.bf16 %v237_v60, %v237_v60  ;;  %v1379_v55 = vld [vmem:[#allocation7 + $0x274] ss:$12 sps:$4 sm:$0xff]   ;;  %v1377_v56 = vld [vmem:[#allocation7 + $0x270] ss:$12 sps:$4 sm:$0xff]   ;;  %v1382_v57 = vld [vmem:[#allocation7 + $0x28c] ss:$12 sps:$4 sm:$0xff]  }
  0xcc   :  { %v232_v46 = vadd.f32 %v228_v1, %v204_v41  ;;  %v1380_v58 = vld [vmem:[#allocation7 + $0x288] ss:$12 sps:$4 sm:$0xff]   ;;  %v1385_v60 = vld [vmem:[#allocation7 + $0x2a4] ss:$12 sps:$4 sm:$0xff]   ;;  %v1383_v61 = vld [vmem:[#allocation7 + $0x2a0] ss:$12 sps:$4 sm:$0xff]  }
  0xcd   :  { %931 = vmatprep.mubr.bf16.mxu0 %v239_v62  ;;  %1013 = vmatprep.mubr.bf16.mxu1 %v239_v62  ;;  %v1388_v62 = vld [vmem:[#allocation7 + $0x2bc] ss:$12 sps:$4 sm:$0xff]  }
  0xce   :  { %932 = vmatmul.mubr.bf16.vlgmr.msra.gmra.mrb[0].mxu0 %v238_v3  ;;  %1014 = vmatmul.mubr.bf16.vlgmr.msra.gmra.mrb[0].mxu1 %v238_v3  ;;  %v236_v50 = vmax.f32 %v232_v46, 0.0  ;;  %v1391_v3 = vld [vmem:[#allocation7 + $0x2d4] ss:$12 sps:$4 sm:$0xff]  }
  0xcf   :  { %941 = vmatpush1.bf16.msra.mxu0 %v1331_v2  ;;  %1224 = vmatpush3.bf16.msra.mxu1 %v1335_v4  ;;  %v1386_v2 = vld [vmem:[#allocation7 + $0x2b8] ss:$12 sps:$4 sm:$0xff]   ;;  %v1389_v4 = vld [vmem:[#allocation7 + $0x2d0] ss:$12 sps:$4 sm:$0xff]  }
  0xd0   :  { %972 = vmatprep.mubr.bf16.mxu0 %v241_v12  ;;  %1053 = vmatprep.mubr.bf16.mxu1 %v241_v12  ;;  %v240_v52 = vpack.c.bf16 %v236_v50, %v236_v50 }
  0xd1   :  { %942 = vmatprep.subr.bf16.mxu0 %v1338_v6  ;;  %1225 = vmatprep.subr.bf16.mxu1 %v1339_v10  ;;  %v1394_v6 = vld [vmem:[#allocation7 + $0x2ec] ss:$12 sps:$4 sm:$0xff]   ;;  %v1392_v10 = vld [vmem:[#allocation7 + $0x2e8] ss:$12 sps:$4 sm:$0xff]  }
  0xd3   :  { %943 = vmatpush1.bf16.msra.mxu0 %v1336_v13  ;;  %1226 = vmatpush3.bf16.msra.mxu1 %v1340_v14 }
  0xd4   :  { %944 = vmatprep.subr.bf16.mxu0 %v1343_v16  ;;  %1227 = vmatprep.subr.bf16.mxu1 %v1344_v17  ;;  %v370_v16 = vld [vmem:[%s1653_s4] sm:$0x7] }
  0xd5   :  { %v383_v17 = vrot.slane %v370_v16, %v1568_v5  ;;  %v375_v26 = vrot.slane %v370_v16, %v1554_v59  ;;  %v379_v28 = vrot.slane %v370_v16, %v1561_v0 }
  0xd7   :  { %945 = vmatpush1.bf16.msra.mxu0 %v1341_v20  ;;  %1228 = vmatpush3.bf16.msra.mxu1 %v1345_v21 }
  0xd8   :  { %946 = vmatprep.subr.bf16.mxu0 %v1348_v23  ;;  %1229 = vmatprep.subr.bf16.mxu1 %v1349_v24 }
  0xdb   :  { %947 = vmatpush1.bf16.msra.mxu0 %v1346_v29  ;;  %1230 = vmatpush3.bf16.msra.mxu1 %v1350_v63  ;;  %v1064_v63 = vld [vmem:[%s1654_s5] sm:$0x7] }
  0xdc   :  { %948 = vmatprep.subr.bf16.mxu0 %v1353_v7  ;;  %1231 = vmatprep.subr.bf16.mxu1 %v1354_v31  ;;  %v1069_v7 = vrot.slane %v1064_v63, %v1554_v59  ;;  %v1073_v25 = vrot.slane %v1064_v63, %v1561_v0 }
  0xdf   :  { %949 = vmatpush1.bf16.msra.mxu0 %v1351_v33  ;;  %1232 = vmatpush3.bf16.msra.mxu1 %v1355_v34 }
  0xe0   :  { %950 = vmatprep.subr.bf16.mxu0 %v1358_v37  ;;  %1233 = vmatprep.subr.bf16.mxu1 %v1359_v38  ;;  %v1077_v38 = vrot.slane %v1064_v63, %v1568_v5 }
  0xe3   :  { %951 = vmatpush1.bf16.msra.mxu0 %v1356_v8  ;;  %1234 = vmatpush3.bf16.msra.mxu1 %v1360_v40 }
  0xe4   :  { %952 = vmatprep.subr.bf16.mxu0 %v1363_v42  ;;  %1235 = vmatprep.subr.bf16.mxu1 %v1364_v43  ;;  %v1200_v42 = vld [vmem:[#allocation2] ss:$0 sm:$0xff] }
  0xe7   :  { %953 = vmatpush1.bf16.msra.mxu0 %v1361_v9  ;;  %1236 = vmatpush3.bf16.msra.mxu1 %v1365_v45 }
  0xe8   :  { %954 = vmatprep.subr.bf16.mxu0 %v1368_v47  ;;  %1237 = vmatprep.subr.bf16.mxu1 %v1369_v27 }
  0xeb   :  { %955 = vmatpush1.bf16.msra.mxu0 %v1366_v48  ;;  %1238 = vmatpush3.bf16.msra.mxu1 %v1370_v49 }
  0xec   :  { %956 = vmatprep.subr.bf16.mxu0 %v1373_v44 }
  0xee   :  { %1054 = vmatmul.mubr.bf16.vlgmr.msra.gmra.mrb[4].mxu1 %v240_v52 }
  0xef   :  { %957 = vmatpush1.bf16.msra.mxu0 %v1371_v51 }
  0xf0   :  { %958 = vmatprep.subr.bf16.mxu0 %v1376_v53 }
  0xf3   :  { %959 = vmatpush1.bf16.msra.mxu0 %v1374_v54 }
  0xf4   :  { %960 = vmatprep.subr.bf16.mxu0 %v1379_v55 }
  0xf7   :  { %961 = vmatpush1.bf16.msra.mxu0 %v1377_v56 }
  0xf8   :  { %962 = vmatprep.subr.bf16.mxu0 %v1382_v57 }
  0xfb   :  { %963 = vmatpush1.bf16.msra.mxu0 %v1380_v58 }
  0xfc   :  { %964 = vmatprep.subr.bf16.mxu0 %v1385_v60 }
  0xff   :  { %965 = vmatpush1.bf16.msra.mxu0 %v1383_v61 }
 0x100   :  { %966 = vmatprep.subr.bf16.mxu0 %v1388_v62 }
 0x103   :  { %967 = vmatpush1.bf16.msra.mxu0 %v1386_v2 }
 0x104   :  { %968 = vmatprep.subr.bf16.mxu0 %v1391_v3 }
 0x107   :  { %969 = vmatpush1.bf16.msra.mxu0 %v1389_v4 }
 0x108   :  { %970 = vmatprep.subr.bf16.mxu0 %v1394_v6 }
 0x10b   :  { %971 = vmatpush1.bf16.msra.mxu0 %v1392_v10 }
 0x10e   :  { %973 = vmatmul.mubr.bf16.vlgmr.msra.gmra.mrb[0].mxu0 %v240_v52 }
 0x1a1   :  { %v1217_v11 = vpop.f32.mrb[0].mxu1 }
 0x1a2   :  { %v1218_v12 = vpop.f32.mrb[1].mxu1 }
 0x1a3   :  { %v1219_v13 = vadd.f32 %v1218_v12, %v1217_v11  ;;  %v1220_v14 = vpop.f32.mrb[2].mxu1 }
 0x1a4   :  { %v1221_v15 = vpop.f32.mrb[3].mxu1 }
 0x1a5   :  { %v1016_v20 = vadd.f32 %v1219_v13, %v383_v17 }
 0x1c1   :  { %v1239_v18 = vpop.f32.mrb[4].mxu1 }
 0x1c2   :  { %v1240_v19 = vpop.f32.mrb[5].mxu1 }
 0x1c3   :  { %v1241_v21 = vadd.f32 %v1240_v19, %v1239_v18  ;;  %v1242_v22 = vpop.f32.mrb[6].mxu1 }
 0x1c4   :  { %v1243_v23 = vpop.f32.mrb[7].mxu1 }
 0x1c5   :  { %v1056_v24 = vadd.f32 %v1241_v21, %v1016_v20 }
 0x1c7   :  { %v1063_v36 = vmax.f32 %v1056_v24, 0.0 }
 0x1c9   :  { %v1083_v40 = vmul.f32 %v1077_v38, %v1063_v36 }
 0x1e1   :  { %v974_v29 = vpop.f32.mrb[0].mxu0 }
 0x1e2   :  { %v1245_v30 = vadd.f32 %v974_v29, %v375_v26  ;;  %v976_v31 = vpop.f32.mrb[1].mxu0 }
 0x1e3   :  { %v1246_v32 = vadd.f32 %v976_v31, %v379_v28  ;;  %v978_v33 = vpop.f32.mrb[2].mxu0 }
 0x1e4   :  { %v1061_v34 = vmax.f32 %v1245_v30, 0.0  ;;  %v979_v35 = vpop.f32.mrb[3].mxu0 }
 0x1e5   :  { %v1062_v37 = vmax.f32 %v1246_v32, 0.0 }
 0x1e6   :  { %v1081_v39 = vmul.f32 %v1069_v7, %v1061_v34 }
 0x1e7   :  { %v1082_v8 = vmul.f32 %v1073_v25, %v1062_v37 }
 0x1e9   :  { %v1084_v41 = vadd.f32 %v1082_v8, %v1081_v39 }
 0x1eb   :  { %v1085_v1 = vadd.f32 %v1084_v41, %v1083_v40 }
 0x1ed   :  { %1086 = vadd.xlane.f32.xlu0 %v1085_v1 }
 0x27a   :  { %v1087_v59 = vpop.xlane.xlu0 %1086 }
 0x27b   :  { %v1095_v43 = vadd.f32 %v1200_v42, %v1087_v59 }
 0x27d   :  { %1097 = vst.msk [vmem:[%s1656_s7] sm:$0xff] %vm1096_vm0, %v1095_v43 }
 0x27e   :  { %1102 = vsyncpa [#allocation4], 1 }
 0x27f   :  { %1103 = vsyncpa [#allocation6], 1 }

</bundles_post_ra>
